<compile_context>
chip_gen: v6e
topology: v6e:2x2x1
jax: 0.10.0
libtpu: 0.0.40
codegen_flags: <defaults>
</compile_context>

<pallas_src>
import functools

import jax
import jax.numpy as jnp
import numpy as np
from jax import lax
from jax.experimental import pallas as pl
from jax.experimental.pallas import tpu as pltpu


def _lstm_kernel(p_ref, w_hh_ref, h_out_ref, h_ref, c_ref, *,
                 hidden_size, time_chunk):
    """One grid step = `time_chunk` timesteps of the LSTM recurrence.

    p_ref:     (time_chunk, B, 4H)  precomputed x @ W_ih^T + (b_ih + b_hh)
    w_hh_ref:  (H, 4H)              recurrent weight, pre-transposed
    h_out_ref: (B, H)               hidden state of the final timestep
    h_ref/c_ref: (B, H) VMEM scratch carrying the state across grid steps.
    PyTorch gate order (i, f, g, o) is preserved along the 4H axis.
    """
    chunk = pl.program_id(0)
    H = hidden_size

    # Zero the recurrent state at the first time chunk.
    @pl.when(chunk == 0)
    def _():
        h_ref[...] = jnp.zeros_like(h_ref)
        c_ref[...] = jnp.zeros_like(c_ref)

    w_hh = w_hh_ref[...]                      # (H, 4H) — hoisted out of the loop

    def step(t, carry):
        h, c = carry
        # Serial critical path per step: one MXU matmul + VPU/EUP gate math.
        gates = p_ref[t] + jnp.dot(h, w_hh, preferred_element_type=jnp.float32)
        i_g = jax.nn.sigmoid(gates[:, 0 * H:1 * H])
        f_g = jax.nn.sigmoid(gates[:, 1 * H:2 * H])
        g_g = jnp.tanh(gates[:, 2 * H:3 * H])
        o_g = jax.nn.sigmoid(gates[:, 3 * H:4 * H])
        c = f_g * c + i_g * g_g
        h = o_g * jnp.tanh(c)
        return (h, c)

    # Unrolled inner time loop: lets the LLO scheduler overlap the next step's
    # recurrent matmul push with the previous step's EUP/VPU gate work.
    h_new, c_new = lax.fori_loop(0, time_chunk, step,
                                 (h_ref[...], c_ref[...]), unroll=True)
    h_ref[...] = h_new
    c_ref[...] = c_new

    @pl.when(chunk == pl.num_programs(0) - 1)
    def _():
        h_out_ref[...] = h_new.astype(h_out_ref.dtype)


def lstm_forward(x, params, *, time_chunk=None):
    """x: (batch, seq, input_size) float32 -> (batch, output_size) float32."""
    w_ih, w_hh, b_ih, b_hh, fc_w, fc_b = params
    B, S, I = x.shape
    H = w_hh.shape[1]

    # ---- pad batch to the f32 sublane granule (8) --------------------------
    B_pad = ((B + 7) // 8) * 8
    if B_pad != B:
        x = jnp.pad(x, ((0, B_pad - B), (0, 0), (0, 0)))

    # ---- hoist the input projection out of the recurrence ------------------
    # One (S*B, I) x (I, 4H) matmul instead of S tiny matmuls inside the kernel.
    x_tm = jnp.transpose(x, (1, 0, 2)).astype(jnp.float32)       # (S, B_pad, I)
    bias = (b_ih + b_hh).astype(jnp.float32)                     # (4H,)
    p = (jnp.dot(x_tm.reshape(S * B_pad, I), w_ih.T.astype(jnp.float32),
                 preferred_element_type=jnp.float32) + bias)
    p = p.reshape(S, B_pad, 4 * H)                               # (S, B_pad, 4H)

    # ---- time chunking ------------------------------------------------------
    if time_chunk is None:
        # Largest divisor of S up to 32 timesteps resident per grid step.
        time_chunk = max(d for d in range(1, min(S, 32) + 1) if S % d == 0)
    assert S % time_chunk == 0
    grid = (S // time_chunk,)

    w_hh_t = w_hh.T.astype(jnp.float32)                          # (H, 4H)
    # TODO(synk): on v6e/v7x, cast w_hh_t / p to bfloat16 for the MXU (keeping
    # preferred_element_type=f32 and f32 c/h state); kept f32 here so the tight
    # tolerance check against the f32 reference holds on all generations.

    kernel = functools.partial(_lstm_kernel, hidden_size=H,
                               time_chunk=time_chunk)

    h_last = pl.pallas_call(
        kernel,
        out_shape=jax.ShapeDtypeStruct((B_pad, H), jnp.float32),
        grid_spec=pltpu.PrefetchScalarGridSpec(
            num_scalar_prefetch=0,
            grid=grid,
            in_specs=[
                # Pre-activations for this time chunk: lane-dense 4H last dim.
                pl.BlockSpec((time_chunk, B_pad, 4 * H), lambda c: (c, 0, 0)),
                # Recurrent weight, constant index map (fetched once).
                pl.BlockSpec((H, 4 * H), lambda c: (0, 0)),
            ],
            out_specs=pl.BlockSpec((B_pad, H), lambda c: (0, 0)),
            scratch_shapes=[
                pltpu.VMEM((B_pad, H), jnp.float32),   # h state
                pltpu.VMEM((B_pad, H), jnp.float32),   # c state
            ],
        ),
        compiler_params=pltpu.CompilerParams(
            dimension_semantics=("arbitrary",)),       # serial recurrence
    )(p, w_hh_t)

    # ---- FC head: runs once on the last hidden state; done in XLA ----------
    return h_last[:B] @ fc_w.T.astype(jnp.float32) + fc_b


def lstm_reference(x, params):
    """Pure-JAX reference matching torch.nn.LSTM(batch_first=True) + Linear."""
    w_ih, w_hh, b_ih, b_hh, fc_w, fc_b = params
    B = x.shape[0]
    H = w_hh.shape[1]

    def step(carry, x_t):
        h, c = carry
        gates = x_t @ w_ih.T + b_ih + h @ w_hh.T + b_hh
        i, f, g, o = jnp.split(gates, 4, axis=-1)
        i, f, o = jax.nn.sigmoid(i), jax.nn.sigmoid(f), jax.nn.sigmoid(o)
        g = jnp.tanh(g)
        c = f * c + i * g
        h = o * jnp.tanh(c)
        return (h, c), None

    h0 = jnp.zeros((B, H), jnp.float32)
    c0 = jnp.zeros((B, H), jnp.float32)
    (h_last, _), _ = lax.scan(step, (h0, c0), jnp.transpose(x, (1, 0, 2)))
    return h_last @ fc_w.T + fc_b


def init_params(key, input_size, hidden_size, output_size):
    """Deterministic init mimicking PyTorch's U(-1/sqrt(H), 1/sqrt(H))."""
    ks = jax.random.split(key, 6)
    k = 1.0 / np.sqrt(hidden_size)
    u = lambda kk, shape: jax.random.uniform(kk, shape, jnp.float32, -k, k)
    w_ih = u(ks[0], (4 * hidden_size, input_size))
    w_hh = u(ks[1], (4 * hidden_size, hidden_size))
    b_ih = u(ks[2], (4 * hidden_size,))
    b_hh = u(ks[3], (4 * hidden_size,))
    fc_w = u(ks[4], (output_size, hidden_size))
    fc_b = u(ks[5], (output_size,))
    return (w_ih, w_hh, b_ih, b_hh, fc_w, fc_b)


if __name__ == "__main__":
    batch, seq, input_size, hidden_size, output_size = 2, 8, 4, 32, 4

    key = jax.random.PRNGKey(0)
    kx, kp = jax.random.split(key)
    x = jax.random.normal(kx, (batch, seq, input_size), jnp.float32)
    params = init_params(kp, input_size, hidden_size, output_size)

    out = jax.block_until_ready(lstm_forward(x, params))
    ref = jax.block_until_ready(lstm_reference(x, params))

    np.testing.assert_allclose(np.asarray(out), np.asarray(ref),
                               rtol=1e-5, atol=1e-5)
    print("KERNEL_OK")
</pallas_src>

<mosaic_0001>
module attributes {stable_mosaic.version = 11 : i64} {
  func.func @_lstm_kernel(%arg0: i32, %arg1: memref<8x8x128xf32, #tpu.memory_space<vmem>>, %arg2: memref<32x128xf32, #tpu.memory_space<vmem>>, %arg3: memref<8x32xf32, #tpu.memory_space<vmem>>, %arg4: memref<8x32xf32, #tpu.memory_space<vmem>>, %arg5: memref<8x32xf32, #tpu.memory_space<vmem>>) attributes {dimension_semantics = [#tpu.dimension_semantics<arbitrary>], iteration_bounds = array<i64: 1>, scalar_prefetch = 0 : i64, scratch_operands = 2 : i64, tpu.core_type = #tpu.core_type<tc>, window_params = [{transform_indices = @transform_0, window_bounds = array<i64: 8, 8, 128>}, {pipeline_mode = #tpu.pipeline_mode<synchronous>, transform_indices = @transform_1, window_bounds = array<i64: 32, 128>}, {pipeline_mode = #tpu.pipeline_mode<synchronous>, transform_indices = @transform_2, window_bounds = array<i64: 8, 32>}]} {
    %c0_i32 = arith.constant 0 : i32
    %0 = arith.cmpi eq, %arg0, %c0_i32 : i32
    %1 = arith.extui %0 : i1 to i32
    %c0_i32_0 = arith.constant 0 : i32
    %2 = arith.cmpi ne, %1, %c0_i32_0 : i32
    scf.if %2 {
      %cst_60 = arith.constant 0.000000e+00 : f32
      %251 = vector.broadcast %cst_60 : f32 to vector<8x32xf32>
      %c0_61 = arith.constant 0 : index
      %c0_62 = arith.constant 0 : index
      %252 = vector.load %arg4[%c0_61, %c0_62] : memref<8x32xf32, #tpu.memory_space<vmem>>, vector<8x32xf32>
      tpu.vector_store %arg4[%c0_61, %c0_62], %251 {strides = array<i32>} : memref<8x32xf32, #tpu.memory_space<vmem>>, vector<8x32xf32>,
      %cst_63 = arith.constant 0.000000e+00 : f32
      %253 = vector.broadcast %cst_63 : f32 to vector<8x32xf32>
      %c0_64 = arith.constant 0 : index
      %c0_65 = arith.constant 0 : index
      %254 = vector.load %arg5[%c0_64, %c0_65] : memref<8x32xf32, #tpu.memory_space<vmem>>, vector<8x32xf32>
      tpu.vector_store %arg5[%c0_64, %c0_65], %253 {strides = array<i32>} : memref<8x32xf32, #tpu.memory_space<vmem>>, vector<8x32xf32>,
    } else {
    }
    %c0 = arith.constant 0 : index
    %c0_1 = arith.constant 0 : index
    %3 = vector.load %arg2[%c0, %c0_1] : memref<32x128xf32, #tpu.memory_space<vmem>>, vector<32x128xf32>
    %c0_2 = arith.constant 0 : index
    %c0_3 = arith.constant 0 : index
    %4 = vector.load %arg4[%c0_2, %c0_3] : memref<8x32xf32, #tpu.memory_space<vmem>>, vector<8x32xf32>
    %c0_4 = arith.constant 0 : index
    %c0_5 = arith.constant 0 : index
    %5 = vector.load %arg5[%c0_4, %c0_5] : memref<8x32xf32, #tpu.memory_space<vmem>>, vector<8x32xf32>
    %c0_i32_6 = arith.constant 0 : i32
    %6 = arith.index_cast %c0_i32_6 : i32 to index
    %c0_7 = arith.constant 0 : index
    %c0_8 = arith.constant 0 : index
    %7 = vector.load %arg1[%6, %c0_7, %c0_8] : memref<8x8x128xf32, #tpu.memory_space<vmem>>, vector<1x8x128xf32>
    %8 = vector.shape_cast %7 : vector<1x8x128xf32> to vector<8x128xf32>
    %cst = arith.constant dense<0.000000e+00> : vector<8x128xf32>
    %9 = tpu.matmul %4, %3, %cst {dimension_numbers = #tpu.dot_dimension_numbers<[1], [0], [0], [1], [0, 0, 1, 1], [], []>} : vector<8x32xf32>, vector<32x128xf32>, vector<8x128xf32> -> vector<8x128xf32>
    %10 = arith.addf %8, %9 : vector<8x128xf32>
    %11 = vector.extract_strided_slice %10 {offsets = [0, 0], sizes = [8, 32], strides = [1, 1]} : vector<8x128xf32> to vector<8x32xf32>
    %12 = arith.negf %11 : vector<8x32xf32>
    %13 = math.exp %12 : vector<8x32xf32>
    %cst_9 = arith.constant 1.000000e+00 : f32
    %14 = vector.broadcast %cst_9 : f32 to vector<8x32xf32>
    %15 = arith.addf %14, %13 : vector<8x32xf32>
    %16 = arith.divf %14, %15 : vector<8x32xf32>
    %17 = vector.extract_strided_slice %10 {offsets = [0, 32], sizes = [8, 32], strides = [1, 1]} : vector<8x128xf32> to vector<8x32xf32>
    %18 = arith.negf %17 : vector<8x32xf32>
    %19 = math.exp %18 : vector<8x32xf32>
    %cst_10 = arith.constant 1.000000e+00 : f32
    %20 = vector.broadcast %cst_10 : f32 to vector<8x32xf32>
    %21 = arith.addf %20, %19 : vector<8x32xf32>
    %22 = arith.divf %20, %21 : vector<8x32xf32>
    %23 = vector.extract_strided_slice %10 {offsets = [0, 64], sizes = [8, 32], strides = [1, 1]} : vector<8x128xf32> to vector<8x32xf32>
    %24 = math.tanh %23 : vector<8x32xf32>
    %25 = vector.extract_strided_slice %10 {offsets = [0, 96], sizes = [8, 32], strides = [1, 1]} : vector<8x128xf32> to vector<8x32xf32>
    %26 = arith.negf %25 : vector<8x32xf32>
    %27 = math.exp %26 : vector<8x32xf32>
    %cst_11 = arith.constant 1.000000e+00 : f32
    %28 = vector.broadcast %cst_11 : f32 to vector<8x32xf32>
    %29 = arith.addf %28, %27 : vector<8x32xf32>
    %30 = arith.divf %28, %29 : vector<8x32xf32>
    %31 = arith.mulf %22, %5 : vector<8x32xf32>
    %32 = arith.mulf %16, %24 : vector<8x32xf32>
    %33 = arith.addf %31, %32 : vector<8x32xf32>
    %34 = math.tanh %33 : vector<8x32xf32>
    %35 = arith.mulf %30, %34 : vector<8x32xf32>
    %c1_i32 = arith.constant 1 : i32
    %36 = arith.index_cast %c1_i32 : i32 to index
    %c0_12 = arith.constant 0 : index
    %c0_13 = arith.constant 0 : index
    %37 = vector.load %arg1[%36, %c0_12, %c0_13] : memref<8x8x128xf32, #tpu.memory_space<vmem>>, vector<1x8x128xf32>
    %38 = vector.shape_cast %37 : vector<1x8x128xf32> to vector<8x128xf32>
    %cst_14 = arith.constant dense<0.000000e+00> : vector<8x128xf32>
    %39 = tpu.matmul %35, %3, %cst_14 {dimension_numbers = #tpu.dot_dimension_numbers<[1], [0], [0], [1], [0, 0, 1, 1], [], []>} : vector<8x32xf32>, vector<32x128xf32>, vector<8x128xf32> -> vector<8x128xf32>
    %40 = arith.addf %38, %39 : vector<8x128xf32>
    %41 = vector.extract_strided_slice %40 {offsets = [0, 0], sizes = [8, 32], strides = [1, 1]} : vector<8x128xf32> to vector<8x32xf32>
    %42 = arith.negf %41 : vector<8x32xf32>
    %43 = math.exp %42 : vector<8x32xf32>
    %cst_15 = arith.constant 1.000000e+00 : f32
    %44 = vector.broadcast %cst_15 : f32 to vector<8x32xf32>
    %45 = arith.addf %44, %43 : vector<8x32xf32>
    %46 = arith.divf %44, %45 : vector<8x32xf32>
    %47 = vector.extract_strided_slice %40 {offsets = [0, 32], sizes = [8, 32], strides = [1, 1]} : vector<8x128xf32> to vector<8x32xf32>
    %48 = arith.negf %47 : vector<8x32xf32>
    %49 = math.exp %48 : vector<8x32xf32>
    %cst_16 = arith.constant 1.000000e+00 : f32
    %50 = vector.broadcast %cst_16 : f32 to vector<8x32xf32>
    %51 = arith.addf %50, %49 : vector<8x32xf32>
    %52 = arith.divf %50, %51 : vector<8x32xf32>
    %53 = vector.extract_strided_slice %40 {offsets = [0, 64], sizes = [8, 32], strides = [1, 1]} : vector<8x128xf32> to vector<8x32xf32>
    %54 = math.tanh %53 : vector<8x32xf32>
    %55 = vector.extract_strided_slice %40 {offsets = [0, 96], sizes = [8, 32], strides = [1, 1]} : vector<8x128xf32> to vector<8x32xf32>
    %56 = arith.negf %55 : vector<8x32xf32>
    %57 = math.exp %56 : vector<8x32xf32>
    %cst_17 = arith.constant 1.000000e+00 : f32
    %58 = vector.broadcast %cst_17 : f32 to vector<8x32xf32>
    %59 = arith.addf %58, %57 : vector<8x32xf32>
    %60 = arith.divf %58, %59 : vector<8x32xf32>
    %61 = arith.mulf %52, %33 : vector<8x32xf32>
    %62 = arith.mulf %46, %54 : vector<8x32xf32>
    %63 = arith.addf %61, %62 : vector<8x32xf32>
    %64 = math.tanh %63 : vector<8x32xf32>
    %65 = arith.mulf %60, %64 : vector<8x32xf32>
    %c2_i32 = arith.constant 2 : i32
    %66 = arith.index_cast %c2_i32 : i32 to index
    %c0_18 = arith.constant 0 : index
    %c0_19 = arith.constant 0 : index
    %67 = vector.load %arg1[%66, %c0_18, %c0_19] : memref<8x8x128xf32, #tpu.memory_space<vmem>>, vector<1x8x128xf32>
    %68 = vector.shape_cast %67 : vector<1x8x128xf32> to vector<8x128xf32>
    %cst_20 = arith.constant dense<0.000000e+00> : vector<8x128xf32>
    %69 = tpu.matmul %65, %3, %cst_20 {dimension_numbers = #tpu.dot_dimension_numbers<[1], [0], [0], [1], [0, 0, 1, 1], [], []>} : vector<8x32xf32>, vector<32x128xf32>, vector<8x128xf32> -> vector<8x128xf32>
    %70 = arith.addf %68, %69 : vector<8x128xf32>
    %71 = vector.extract_strided_slice %70 {offsets = [0, 0], sizes = [8, 32], strides = [1, 1]} : vector<8x128xf32> to vector<8x32xf32>
    %72 = arith.negf %71 : vector<8x32xf32>
    %73 = math.exp %72 : vector<8x32xf32>
    %cst_21 = arith.constant 1.000000e+00 : f32
    %74 = vector.broadcast %cst_21 : f32 to vector<8x32xf32>
    %75 = arith.addf %74, %73 : vector<8x32xf32>
    %76 = arith.divf %74, %75 : vector<8x32xf32>
    %77 = vector.extract_strided_slice %70 {offsets = [0, 32], sizes = [8, 32], strides = [1, 1]} : vector<8x128xf32> to vector<8x32xf32>
    %78 = arith.negf %77 : vector<8x32xf32>
    %79 = math.exp %78 : vector<8x32xf32>
    %cst_22 = arith.constant 1.000000e+00 : f32
    %80 = vector.broadcast %cst_22 : f32 to vector<8x32xf32>
    %81 = arith.addf %80, %79 : vector<8x32xf32>
    %82 = arith.divf %80, %81 : vector<8x32xf32>
    %83 = vector.extract_strided_slice %70 {offsets = [0, 64], sizes = [8, 32], strides = [1, 1]} : vector<8x128xf32> to vector<8x32xf32>
    %84 = math.tanh %83 : vector<8x32xf32>
    %85 = vector.extract_strided_slice %70 {offsets = [0, 96], sizes = [8, 32], strides = [1, 1]} : vector<8x128xf32> to vector<8x32xf32>
    %86 = arith.negf %85 : vector<8x32xf32>
    %87 = math.exp %86 : vector<8x32xf32>
    %cst_23 = arith.constant 1.000000e+00 : f32
    %88 = vector.broadcast %cst_23 : f32 to vector<8x32xf32>
    %89 = arith.addf %88, %87 : vector<8x32xf32>
    %90 = arith.divf %88, %89 : vector<8x32xf32>
    %91 = arith.mulf %82, %63 : vector<8x32xf32>
    %92 = arith.mulf %76, %84 : vector<8x32xf32>
    %93 = arith.addf %91, %92 : vector<8x32xf32>
    %94 = math.tanh %93 : vector<8x32xf32>
    %95 = arith.mulf %90, %94 : vector<8x32xf32>
    %c3_i32 = arith.constant 3 : i32
    %96 = arith.index_cast %c3_i32 : i32 to index
    %c0_24 = arith.constant 0 : index
    %c0_25 = arith.constant 0 : index
    %97 = vector.load %arg1[%96, %c0_24, %c0_25] : memref<8x8x128xf32, #tpu.memory_space<vmem>>, vector<1x8x128xf32>
    %98 = vector.shape_cast %97 : vector<1x8x128xf32> to vector<8x128xf32>
    %cst_26 = arith.constant dense<0.000000e+00> : vector<8x128xf32>
    %99 = tpu.matmul %95, %3, %cst_26 {dimension_numbers = #tpu.dot_dimension_numbers<[1], [0], [0], [1], [0, 0, 1, 1], [], []>} : vector<8x32xf32>, vector<32x128xf32>, vector<8x128xf32> -> vector<8x128xf32>
    %100 = arith.addf %98, %99 : vector<8x128xf32>
    %101 = vector.extract_strided_slice %100 {offsets = [0, 0], sizes = [8, 32], strides = [1, 1]} : vector<8x128xf32> to vector<8x32xf32>
    %102 = arith.negf %101 : vector<8x32xf32>
    %103 = math.exp %102 : vector<8x32xf32>
    %cst_27 = arith.constant 1.000000e+00 : f32
    %104 = vector.broadcast %cst_27 : f32 to vector<8x32xf32>
    %105 = arith.addf %104, %103 : vector<8x32xf32>
    %106 = arith.divf %104, %105 : vector<8x32xf32>
    %107 = vector.extract_strided_slice %100 {offsets = [0, 32], sizes = [8, 32], strides = [1, 1]} : vector<8x128xf32> to vector<8x32xf32>
    %108 = arith.negf %107 : vector<8x32xf32>
    %109 = math.exp %108 : vector<8x32xf32>
    %cst_28 = arith.constant 1.000000e+00 : f32
    %110 = vector.broadcast %cst_28 : f32 to vector<8x32xf32>
    %111 = arith.addf %110, %109 : vector<8x32xf32>
    %112 = arith.divf %110, %111 : vector<8x32xf32>
    %113 = vector.extract_strided_slice %100 {offsets = [0, 64], sizes = [8, 32], strides = [1, 1]} : vector<8x128xf32> to vector<8x32xf32>
    %114 = math.tanh %113 : vector<8x32xf32>
    %115 = vector.extract_strided_slice %100 {offsets = [0, 96], sizes = [8, 32], strides = [1, 1]} : vector<8x128xf32> to vector<8x32xf32>
    %116 = arith.negf %115 : vector<8x32xf32>
    %117 = math.exp %116 : vector<8x32xf32>
    %cst_29 = arith.constant 1.000000e+00 : f32
    %118 = vector.broadcast %cst_29 : f32 to vector<8x32xf32>
    %119 = arith.addf %118, %117 : vector<8x32xf32>
    %120 = arith.divf %118, %119 : vector<8x32xf32>
    %121 = arith.mulf %112, %93 : vector<8x32xf32>
    %122 = arith.mulf %106, %114 : vector<8x32xf32>
    %123 = arith.addf %121, %122 : vector<8x32xf32>
    %124 = math.tanh %123 : vector<8x32xf32>
    %125 = arith.mulf %120, %124 : vector<8x32xf32>
    %c4_i32 = arith.constant 4 : i32
    %126 = arith.index_cast %c4_i32 : i32 to index
    %c0_30 = arith.constant 0 : index
    %c0_31 = arith.constant 0 : index
    %127 = vector.load %arg1[%126, %c0_30, %c0_31] : memref<8x8x128xf32, #tpu.memory_space<vmem>>, vector<1x8x128xf32>
    %128 = vector.shape_cast %127 : vector<1x8x128xf32> to vector<8x128xf32>
    %cst_32 = arith.constant dense<0.000000e+00> : vector<8x128xf32>
    %129 = tpu.matmul %125, %3, %cst_32 {dimension_numbers = #tpu.dot_dimension_numbers<[1], [0], [0], [1], [0, 0, 1, 1], [], []>} : vector<8x32xf32>, vector<32x128xf32>, vector<8x128xf32> -> vector<8x128xf32>
    %130 = arith.addf %128, %129 : vector<8x128xf32>
    %131 = vector.extract_strided_slice %130 {offsets = [0, 0], sizes = [8, 32], strides = [1, 1]} : vector<8x128xf32> to vector<8x32xf32>
    %132 = arith.negf %131 : vector<8x32xf32>
    %133 = math.exp %132 : vector<8x32xf32>
    %cst_33 = arith.constant 1.000000e+00 : f32
    %134 = vector.broadcast %cst_33 : f32 to vector<8x32xf32>
    %135 = arith.addf %134, %133 : vector<8x32xf32>
    %136 = arith.divf %134, %135 : vector<8x32xf32>
    %137 = vector.extract_strided_slice %130 {offsets = [0, 32], sizes = [8, 32], strides = [1, 1]} : vector<8x128xf32> to vector<8x32xf32>
    %138 = arith.negf %137 : vector<8x32xf32>
    %139 = math.exp %138 : vector<8x32xf32>
    %cst_34 = arith.constant 1.000000e+00 : f32
    %140 = vector.broadcast %cst_34 : f32 to vector<8x32xf32>
    %141 = arith.addf %140, %139 : vector<8x32xf32>
    %142 = arith.divf %140, %141 : vector<8x32xf32>
    %143 = vector.extract_strided_slice %130 {offsets = [0, 64], sizes = [8, 32], strides = [1, 1]} : vector<8x128xf32> to vector<8x32xf32>
    %144 = math.tanh %143 : vector<8x32xf32>
    %145 = vector.extract_strided_slice %130 {offsets = [0, 96], sizes = [8, 32], strides = [1, 1]} : vector<8x128xf32> to vector<8x32xf32>
    %146 = arith.negf %145 : vector<8x32xf32>
    %147 = math.exp %146 : vector<8x32xf32>
    %cst_35 = arith.constant 1.000000e+00 : f32
    %148 = vector.broadcast %cst_35 : f32 to vector<8x32xf32>
    %149 = arith.addf %148, %147 : vector<8x32xf32>
    %150 = arith.divf %148, %149 : vector<8x32xf32>
    %151 = arith.mulf %142, %123 : vector<8x32xf32>
    %152 = arith.mulf %136, %144 : vector<8x32xf32>
    %153 = arith.addf %151, %152 : vector<8x32xf32>
    %154 = math.tanh %153 : vector<8x32xf32>
    %155 = arith.mulf %150, %154 : vector<8x32xf32>
    %c5_i32 = arith.constant 5 : i32
    %156 = arith.index_cast %c5_i32 : i32 to index
    %c0_36 = arith.constant 0 : index
    %c0_37 = arith.constant 0 : index
    %157 = vector.load %arg1[%156, %c0_36, %c0_37] : memref<8x8x128xf32, #tpu.memory_space<vmem>>, vector<1x8x128xf32>
    %158 = vector.shape_cast %157 : vector<1x8x128xf32> to vector<8x128xf32>
    %cst_38 = arith.constant dense<0.000000e+00> : vector<8x128xf32>
    %159 = tpu.matmul %155, %3, %cst_38 {dimension_numbers = #tpu.dot_dimension_numbers<[1], [0], [0], [1], [0, 0, 1, 1], [], []>} : vector<8x32xf32>, vector<32x128xf32>, vector<8x128xf32> -> vector<8x128xf32>
    %160 = arith.addf %158, %159 : vector<8x128xf32>
    %161 = vector.extract_strided_slice %160 {offsets = [0, 0], sizes = [8, 32], strides = [1, 1]} : vector<8x128xf32> to vector<8x32xf32>
    %162 = arith.negf %161 : vector<8x32xf32>
    %163 = math.exp %162 : vector<8x32xf32>
    %cst_39 = arith.constant 1.000000e+00 : f32
    %164 = vector.broadcast %cst_39 : f32 to vector<8x32xf32>
    %165 = arith.addf %164, %163 : vector<8x32xf32>
    %166 = arith.divf %164, %165 : vector<8x32xf32>
    %167 = vector.extract_strided_slice %160 {offsets = [0, 32], sizes = [8, 32], strides = [1, 1]} : vector<8x128xf32> to vector<8x32xf32>
    %168 = arith.negf %167 : vector<8x32xf32>
    %169 = math.exp %168 : vector<8x32xf32>
    %cst_40 = arith.constant 1.000000e+00 : f32
    %170 = vector.broadcast %cst_40 : f32 to vector<8x32xf32>
    %171 = arith.addf %170, %169 : vector<8x32xf32>
    %172 = arith.divf %170, %171 : vector<8x32xf32>
    %173 = vector.extract_strided_slice %160 {offsets = [0, 64], sizes = [8, 32], strides = [1, 1]} : vector<8x128xf32> to vector<8x32xf32>
    %174 = math.tanh %173 : vector<8x32xf32>
    %175 = vector.extract_strided_slice %160 {offsets = [0, 96], sizes = [8, 32], strides = [1, 1]} : vector<8x128xf32> to vector<8x32xf32>
    %176 = arith.negf %175 : vector<8x32xf32>
    %177 = math.exp %176 : vector<8x32xf32>
    %cst_41 = arith.constant 1.000000e+00 : f32
    %178 = vector.broadcast %cst_41 : f32 to vector<8x32xf32>
    %179 = arith.addf %178, %177 : vector<8x32xf32>
    %180 = arith.divf %178, %179 : vector<8x32xf32>
    %181 = arith.mulf %172, %153 : vector<8x32xf32>
    %182 = arith.mulf %166, %174 : vector<8x32xf32>
    %183 = arith.addf %181, %182 : vector<8x32xf32>
    %184 = math.tanh %183 : vector<8x32xf32>
    %185 = arith.mulf %180, %184 : vector<8x32xf32>
    %c6_i32 = arith.constant 6 : i32
    %186 = arith.index_cast %c6_i32 : i32 to index
    %c0_42 = arith.constant 0 : index
    %c0_43 = arith.constant 0 : index
    %187 = vector.load %arg1[%186, %c0_42, %c0_43] : memref<8x8x128xf32, #tpu.memory_space<vmem>>, vector<1x8x128xf32>
    %188 = vector.shape_cast %187 : vector<1x8x128xf32> to vector<8x128xf32>
    %cst_44 = arith.constant dense<0.000000e+00> : vector<8x128xf32>
    %189 = tpu.matmul %185, %3, %cst_44 {dimension_numbers = #tpu.dot_dimension_numbers<[1], [0], [0], [1], [0, 0, 1, 1], [], []>} : vector<8x32xf32>, vector<32x128xf32>, vector<8x128xf32> -> vector<8x128xf32>
    %190 = arith.addf %188, %189 : vector<8x128xf32>
    %191 = vector.extract_strided_slice %190 {offsets = [0, 0], sizes = [8, 32], strides = [1, 1]} : vector<8x128xf32> to vector<8x32xf32>
    %192 = arith.negf %191 : vector<8x32xf32>
    %193 = math.exp %192 : vector<8x32xf32>
    %cst_45 = arith.constant 1.000000e+00 : f32
    %194 = vector.broadcast %cst_45 : f32 to vector<8x32xf32>
    %195 = arith.addf %194, %193 : vector<8x32xf32>
    %196 = arith.divf %194, %195 : vector<8x32xf32>
    %197 = vector.extract_strided_slice %190 {offsets = [0, 32], sizes = [8, 32], strides = [1, 1]} : vector<8x128xf32> to vector<8x32xf32>
    %198 = arith.negf %197 : vector<8x32xf32>
    %199 = math.exp %198 : vector<8x32xf32>
    %cst_46 = arith.constant 1.000000e+00 : f32
    %200 = vector.broadcast %cst_46 : f32 to vector<8x32xf32>
    %201 = arith.addf %200, %199 : vector<8x32xf32>
    %202 = arith.divf %200, %201 : vector<8x32xf32>
    %203 = vector.extract_strided_slice %190 {offsets = [0, 64], sizes = [8, 32], strides = [1, 1]} : vector<8x128xf32> to vector<8x32xf32>
    %204 = math.tanh %203 : vector<8x32xf32>
    %205 = vector.extract_strided_slice %190 {offsets = [0, 96], sizes = [8, 32], strides = [1, 1]} : vector<8x128xf32> to vector<8x32xf32>
    %206 = arith.negf %205 : vector<8x32xf32>
    %207 = math.exp %206 : vector<8x32xf32>
    %cst_47 = arith.constant 1.000000e+00 : f32
    %208 = vector.broadcast %cst_47 : f32 to vector<8x32xf32>
    %209 = arith.addf %208, %207 : vector<8x32xf32>
    %210 = arith.divf %208, %209 : vector<8x32xf32>
    %211 = arith.mulf %202, %183 : vector<8x32xf32>
    %212 = arith.mulf %196, %204 : vector<8x32xf32>
    %213 = arith.addf %211, %212 : vector<8x32xf32>
    %214 = math.tanh %213 : vector<8x32xf32>
    %215 = arith.mulf %210, %214 : vector<8x32xf32>
    %c7_i32 = arith.constant 7 : i32
    %216 = arith.index_cast %c7_i32 : i32 to index
    %c0_48 = arith.constant 0 : index
    %c0_49 = arith.constant 0 : index
    %217 = vector.load %arg1[%216, %c0_48, %c0_49] : memref<8x8x128xf32, #tpu.memory_space<vmem>>, vector<1x8x128xf32>
    %218 = vector.shape_cast %217 : vector<1x8x128xf32> to vector<8x128xf32>
    %cst_50 = arith.constant dense<0.000000e+00> : vector<8x128xf32>
    %219 = tpu.matmul %215, %3, %cst_50 {dimension_numbers = #tpu.dot_dimension_numbers<[1], [0], [0], [1], [0, 0, 1, 1], [], []>} : vector<8x32xf32>, vector<32x128xf32>, vector<8x128xf32> -> vector<8x128xf32>
    %220 = arith.addf %218, %219 : vector<8x128xf32>
    %221 = vector.extract_strided_slice %220 {offsets = [0, 0], sizes = [8, 32], strides = [1, 1]} : vector<8x128xf32> to vector<8x32xf32>
    %222 = arith.negf %221 : vector<8x32xf32>
    %223 = math.exp %222 : vector<8x32xf32>
    %cst_51 = arith.constant 1.000000e+00 : f32
    %224 = vector.broadcast %cst_51 : f32 to vector<8x32xf32>
    %225 = arith.addf %224, %223 : vector<8x32xf32>
    %226 = arith.divf %224, %225 : vector<8x32xf32>
    %227 = vector.extract_strided_slice %220 {offsets = [0, 32], sizes = [8, 32], strides = [1, 1]} : vector<8x128xf32> to vector<8x32xf32>
    %228 = arith.negf %227 : vector<8x32xf32>
    %229 = math.exp %228 : vector<8x32xf32>
    %cst_52 = arith.constant 1.000000e+00 : f32
    %230 = vector.broadcast %cst_52 : f32 to vector<8x32xf32>
    %231 = arith.addf %230, %229 : vector<8x32xf32>
    %232 = arith.divf %230, %231 : vector<8x32xf32>
    %233 = vector.extract_strided_slice %220 {offsets = [0, 64], sizes = [8, 32], strides = [1, 1]} : vector<8x128xf32> to vector<8x32xf32>
    %234 = math.tanh %233 : vector<8x32xf32>
    %235 = vector.extract_strided_slice %220 {offsets = [0, 96], sizes = [8, 32], strides = [1, 1]} : vector<8x128xf32> to vector<8x32xf32>
    %236 = arith.negf %235 : vector<8x32xf32>
    %237 = math.exp %236 : vector<8x32xf32>
    %cst_53 = arith.constant 1.000000e+00 : f32
    %238 = vector.broadcast %cst_53 : f32 to vector<8x32xf32>
    %239 = arith.addf %238, %237 : vector<8x32xf32>
    %240 = arith.divf %238, %239 : vector<8x32xf32>
    %241 = arith.mulf %232, %213 : vector<8x32xf32>
    %242 = arith.mulf %226, %234 : vector<8x32xf32>
    %243 = arith.addf %241, %242 : vector<8x32xf32>
    %244 = math.tanh %243 : vector<8x32xf32>
    %245 = arith.mulf %240, %244 : vector<8x32xf32>
    %c8_i32 = arith.constant 8 : i32
    %c0_54 = arith.constant 0 : index
    %c0_55 = arith.constant 0 : index
    %246 = vector.load %arg4[%c0_54, %c0_55] : memref<8x32xf32, #tpu.memory_space<vmem>>, vector<8x32xf32>
    tpu.vector_store %arg4[%c0_54, %c0_55], %245 {strides = array<i32>} : memref<8x32xf32, #tpu.memory_space<vmem>>, vector<8x32xf32>,
    %c0_56 = arith.constant 0 : index
    %c0_57 = arith.constant 0 : index
    %247 = vector.load %arg5[%c0_56, %c0_57] : memref<8x32xf32, #tpu.memory_space<vmem>>, vector<8x32xf32>
    tpu.vector_store %arg5[%c0_56, %c0_57], %243 {strides = array<i32>} : memref<8x32xf32, #tpu.memory_space<vmem>>, vector<8x32xf32>,
    %c0_i32_58 = arith.constant 0 : i32
    %248 = arith.cmpi eq, %arg0, %c0_i32_58 : i32
    %249 = arith.extui %248 : i1 to i32
    %c0_i32_59 = arith.constant 0 : i32
    %250 = arith.cmpi ne, %249, %c0_i32_59 : i32
    scf.if %250 {
      %c0_60 = arith.constant 0 : index
      %c0_61 = arith.constant 0 : index
      %251 = vector.load %arg3[%c0_60, %c0_61] : memref<8x32xf32, #tpu.memory_space<vmem>>, vector<8x32xf32>
      tpu.vector_store %arg3[%c0_60, %c0_61], %245 {strides = array<i32>} : memref<8x32xf32, #tpu.memory_space<vmem>>, vector<8x32xf32>,
    } else {
    }
    return
  }
  func.func @transform_0(%arg0: i32) -> (i32, i32, i32) {
    %c0_i32 = arith.constant 0 : i32
    %c0_i32_0 = arith.constant 0 : i32
    %c0_i32_1 = arith.constant 0 : i32
    return %arg0, %c0_i32, %c0_i32_0 : i32, i32, i32
  }
  func.func @transform_1(%arg0: i32) -> (i32, i32) {
    %c0_i32 = arith.constant 0 : i32
    %c0_i32_0 = arith.constant 0 : i32
    %c0_i32_1 = arith.constant 0 : i32
    return %c0_i32, %c0_i32_0 : i32, i32
  }
  func.func @transform_2(%arg0: i32) -> (i32, i32) {
    %c0_i32 = arith.constant 0 : i32
    %c0_i32_0 = arith.constant 0 : i32
    %c0_i32_1 = arith.constant 0 : i32
    return %c0_i32, %c0_i32_0 : i32, i32
  }
}

</mosaic_0001>

<bundles_post_ra>
// kernel: tpu_custom_call.1
= control target key start
LH: loop header
LB: loop body
LE: loop exit
PB: predicated region body
PF: predicated region fallthrough
CT: control target
= control target key end

     0   :  { %7 = vsyncpa [#allocation5], 0  ;;  %s1355_s0 = inlined_call_operand.hbm [shape: f32[8,8,128], index: 0, kind: input, shape index: {}]   ;;  %s1356_s1 = inlined_call_operand.hbm [shape: f32[32,128], index: 1, kind: input, shape index: {}]   ;;  %s1357_s2 = inlined_call_operand.hbm [shape: f32[8,32], index: 2, kind: output, shape index: {}]  }
   0x1   :  { %8 = vsyncpa [#allocation8], 0 }
   0x2   :  { %9 = vsyncpa [#allocation6], 0  ;;  %s1185_s9 = smov [#allocation4]  }
   0x3   :  { %s15_s10 = sshll.u32 %s1185_s9, 4  ;;  %s16_s10 = int_to_ptr.vmem [resolvable:$true] %s15_s10 }
   0x4   :  { %s1127_s11 = scalar_lea.vmem %s16_s10, 1024  ;;  %p1132_p1 = scmp.lt.s32.totalorder %s16_s10, %s16_s10 }
   0x5   :  { %p1128_p0 = scmp.ne.s32.totalorder %s16_s10, %s1127_s11  ;;  %p1133_p2 = scmp.lt.s32.totalorder %s1127_s11, %s1127_s11 }
   0x7   :  { %p1134_p3 = por %p1133_p2, %p1132_p1 }
   0x9   :  { %p1135_p4 = pnand %p1134_p3, %p1128_p0 }
   0xb   :  { %1138 = shalt.err (!%p1135_p4)
}
   0xc   :  { %s1186_s12 = smov 128   ;;  %s1187_s13 = smov 8  }
   0xd   :  { %21 = dma.hbm_to_vmem [thread:$0]  %s1355_s0, 1024, %s16_s10, [#allocation5], %s1186_s12, %s1186_s12, %s1187_s13  }
   0xe   :  { %s1188_s16 = smov [#allocation7]  }
   0xf   :  { %s27_s17 = sshll.u32 %s1188_s16, 4  ;;  %s28_s17 = int_to_ptr.vmem [resolvable:$true] %s27_s17 }
  0x10   :  { %s1147_s18 = scalar_lea.vmem %s28_s17, 512  ;;  %p1152_p6 = scmp.lt.s32.totalorder %s28_s17, %s28_s17 }
  0x11   :  { %p1148_p5 = scmp.ne.s32.totalorder %s28_s17, %s1147_s18  ;;  %p1153_p7 = scmp.lt.s32.totalorder %s1147_s18, %s1147_s18 }
  0x13   :  { %p1154_p8 = por %p1153_p7, %p1152_p6 }
  0x15   :  { %p1155_p9 = pnand %p1154_p8, %p1148_p5 }
  0x17   :  { %1158 = shalt.err (!%p1155_p9)
}
  0x18   :  { %33 = dma.hbm_to_vmem [thread:$0]  %s1356_s1, 512, %s28_s17, [#allocation8], %s1186_s12, %s1186_s12, %s1187_s13  }
  0x19   :  { %1179 = dma.done.wait [#allocation5], 1024  }
  0x1a   :  { %1180 = vsyncadd [#allocation5], 4294966272 }
  0x1b   :  { %1181 = dma.done.wait [#allocation8], 512  }
  0x1c   :  { %1182 = vsyncadd [#allocation8], 4294966784  ;;  %vm44_vm0 = vcmask 261120   ;;  %v1189_v0 = vmov 0.0   ;;  %vm1190_vm1 = vmmov 0   ;;  %v1226_v1 = vld [vmem:[#allocation7 + $0x18] sm:$0xff] }
  0x1d   :  { %957 = vmatprep.subr.mxu0 %v1189_v0  ;;  %965 = vmatprep.mubr.msk.f32.mxu0 %vm1190_vm1, %v1189_v0  ;;  %45 = vst.msk [vmem:[#allocation2] sm:$0xff] %vm44_vm0, %v1189_v0  ;;  %46 = vst.msk [vmem:[#allocation3] sm:$0xff] %vm44_vm0, %v1189_v0  ;;  %v1228_v2 = vld [vmem:[#allocation7 + $0x10] sm:$0xff]  ;;  %v1233_v3 = vld [vmem:[#allocation7 + $0x8] sm:$0xff]  ;;  %s1191_s0 = smov 64   ;;  %s1192_s1 = smov 32  }
  0x1e   :  { %968 = vmatprep.subr.mxu1 %v1189_v0  ;;  %976 = vmatprep.mubr.msk.f32.mxu1 %vm1190_vm1, %v1189_v0  ;;  %v1239_v4 = vld [vmem:[#allocation7] sm:$0xff]  ;;  %v158_v26 = vld [vmem:[#allocation4 + $0x8] sm:$0xff]  ;;  %v260_v44 = vld [vmem:[#allocation4 + $0x10] sm:$0xff]  ;;  %s1193_s21 = smov 96   ;;  %s1194_s22 = smov [#allocation9]  }
  0x1f   :  { %958 = vmatpush3.msra.mxu0 %v1226_v1  ;;  %969 = vmatpush3.msra.mxu1 %v1226_v1  ;;  %v53_v6 = vld [vmem:[#allocation4] sm:$0xff]  ;;  %v362_v62 = vld [vmem:[#allocation4 + $0x18] sm:$0xff]  ;;  %s891_s23 = sshll.u32 %s1194_s22, 4  ;;  %s892_s23 = int_to_ptr.vmem [resolvable:$true] %s891_s23 }
  0x20   :  { %959 = vmatprep.subr.mxu0 %v1189_v0  ;;  %970 = vmatprep.subr.mxu1 %v1189_v0  ;;  %s1159_s24 = scalar_lea.vmem %s892_s23, 128  ;;  %p1164_p11 = scmp.lt.s32.totalorder %s892_s23, %s892_s23 }
  0x21   :  { %960 = vmatpush3.msra.mxu0 %v1228_v2  ;;  %971 = vmatpush3.msra.mxu1 %v1228_v2  ;;  %p1160_p10 = scmp.ne.s32.totalorder %s892_s23, %s1159_s24  ;;  %p1165_p12 = scmp.lt.s32.totalorder %s1159_s24, %s1159_s24 }
  0x22   :  { %961 = vmatprep.subr.mxu0 %v1189_v0  ;;  %972 = vmatprep.subr.mxu1 %v1189_v0 }
  0x23   :  { %962 = vmatpush3.msra.mxu0 %v1233_v3  ;;  %973 = vmatpush3.msra.mxu1 %v1233_v3  ;;  %p1166_p13 = por %p1165_p12, %p1164_p11 }
  0x24   :  { %v51_v5 = vld [vmem:[#allocation2] sm:$0xff]  ;;  %963 = vmatprep.subr.mxu0 %v1189_v0  ;;  %974 = vmatprep.subr.mxu1 %v1189_v0  ;;  %v52_v11 = vld [vmem:[#allocation3] sm:$0xff] }
  0x25   :  { %964 = vmatpush3.msra.mxu0 %v1239_v4  ;;  %975 = vmatpush3.msra.mxu1 %v1239_v4  ;;  %p1167_p0 = pnand %p1166_p13, %p1160_p10 }
  0x26   :  { %966 = vmatmul.mubr.msk.f32.vlgmr.msra.gmra.mxu0 %vm44_vm0, %v51_v5  ;;  %979 = vmatprep.subr.mxu0 %v1189_v0 }
  0x27   :  { %980 = vmatpush3.msra.mxu0 %v1226_v1  ;;  %987 = vmatprep.mubr.msk.f32.mxu0 %vm1190_vm1, %v1189_v0 }
  0x28   :  { %981 = vmatprep.subr.mxu0 %v1189_v0  ;;  %990 = vmatprep.subr.mxu1 %v1189_v0 }
  0x29   :  { %982 = vmatpush3.msra.mxu0 %v1228_v2 }
  0x2a   :  { %983 = vmatprep.subr.mxu0 %v1189_v0 }
  0x2b   :  { %984 = vmatpush3.msra.mxu0 %v1233_v3 }
  0x2c   :  { %985 = vmatprep.subr.mxu0 %v1189_v0 }
  0x2d   :  { %986 = vmatpush3.msra.mxu0 %v1239_v4 }
  0x2e   :  { %1001 = vmatprep.subr.mxu0 %v1189_v0 }
  0xe6   :  { %v124_v7 = vpop.f32.mrf.mxu0 }
  0xe7   :  { %v128_v8 = vadd.f32 %v124_v7, %v53_v6 }
  0xe8   :  { %v967_v9 = vpop.f32.mrf.mxu0 }
  0xe9   :  { %1055 = vtanh.f32 %v128_v8  ;;  %v902_v12 = vmul.f32 -1.442695, %v128_v8 }
  0xeb   :  { %1057 = vpow2.f32 %v902_v12 }
  0xf6   :  { %v1056_v10 = vpop.eup %1055 }
  0xf7   :  { %142 = vrot.lane.b32.xlu0 %v1056_v10, %s1191_s0 }
  0xf8   :  { %v1058_v13 = vpop.eup %1057 }
  0xf9   :  { %v132_v14 = vadd.f32 1.0, %v1058_v13 }
  0xfb   :  { %137 = vrot.lane.b32.xlu0 %v52_v11, %s1192_s1  ;;  %1059 = vrcp.f32 %v132_v14 }
 0x108   :  { %v1060_v15 = vpop.eup %1059 }
 0x169   :  { %v143_v16 = vpop.permute.xlu0 %142 }
 0x16a   :  { %v145_v17 = vmul.f32 %v1060_v15, %v143_v16 }
 0x16c   :  { %147 = vrot.lane.b32.xlu1 %v145_v17, %s1192_s1 }
 0x16d   :  { %v138_v18 = vpop.permute.xlu0 %137 }
 0x16e   :  { %v140_v19 = vmul.f32 %v1060_v15, %v138_v18 }
 0x1de   :  { %v148_v20 = vpop.permute.xlu1 %147 }
 0x1df   :  { %v150_v21 = vadd.f32 %v148_v20, %v140_v19 }
 0x1e1   :  { %1061 = vtanh.f32 %v150_v21 }
 0x1ee   :  { %v1062_v22 = vpop.eup %1061 }
 0x1ef   :  { %153 = vrot.lane.b32.xlu1 %v1062_v22, %s1191_s0 }
 0x261   :  { %v154_v23 = vpop.permute.xlu1 %153 }
 0x262   :  { %v156_v24 = vmul.f32 %v1060_v15, %v154_v23 }
 0x264   :  { %160 = vrot.lane.b32.xlu0 %v156_v24, %s1192_s1 }
 0x2d6   :  { %v161_v25 = vpop.permute.xlu0 %160 }
 0x2d7   :  { %977 = vmatmul.mubr.msk.f32.vlgmr.msra.gmra.mxu1 %vm44_vm0, %v161_v25 }
 0x2d8   :  { %991 = vmatpush3.msra.mxu1 %v1226_v1  ;;  %998 = vmatprep.mubr.msk.f32.mxu1 %vm1190_vm1, %v1189_v0 }
 0x2d9   :  { %992 = vmatprep.subr.mxu1 %v1189_v0 }
 0x2da   :  { %993 = vmatpush3.msra.mxu1 %v1228_v2 }
 0x2db   :  { %994 = vmatprep.subr.mxu1 %v1189_v0 }
 0x2dc   :  { %995 = vmatpush3.msra.mxu1 %v1233_v3 }
 0x2dd   :  { %996 = vmatprep.subr.mxu1 %v1189_v0 }
 0x2de   :  { %997 = vmatpush3.msra.mxu1 %v1239_v4 }
 0x2df   :  { %1012 = vmatprep.subr.mxu1 %v1189_v0 }
 0x397   :  { %v230_v27 = vpop.f32.mrf.mxu1 }
 0x398   :  { %v234_v28 = vadd.f32 %v230_v27, %v158_v26 }
 0x399   :  { %v978_v29 = vpop.f32.mrf.mxu1 }
 0x39a   :  { %1063 = vtanh.f32 %v234_v28  ;;  %v904_v31 = vmul.f32 -1.442695, %v234_v28 }
 0x39c   :  { %1065 = vpow2.f32 %v904_v31 }
 0x3a7   :  { %v1064_v30 = vpop.eup %1063 }
 0x3a8   :  { %244 = vrot.lane.b32.xlu1 %v1064_v30, %s1191_s0 }
 0x3a9   :  { %v1066_v32 = vpop.eup %1065 }
 0x3aa   :  { %v238_v33 = vadd.f32 1.0, %v1066_v32 }
 0x3ac   :  { %1067 = vrcp.f32 %v238_v33 }
 0x3b9   :  { %v1068_v34 = vpop.eup %1067 }
 0x3ba   :  { %v242_v37 = vmul.f32 %v1068_v34, %v150_v21  ;;  %v464_v21 = vld [vmem:[#allocation4 + $0x20] sm:$0xff] }
 0x41a   :  { %v245_v35 = vpop.permute.xlu1 %244 }
 0x41b   :  { %v247_v36 = vmul.f32 %v1068_v34, %v245_v35 }
 0x41d   :  { %249 = vrot.lane.b32.xlu0 %v247_v36, %s1192_s1 }
 0x48f   :  { %v250_v38 = vpop.permute.xlu0 %249 }
 0x490   :  { %v252_v39 = vadd.f32 %v250_v38, %v242_v37 }
 0x492   :  { %1069 = vtanh.f32 %v252_v39 }
 0x49f   :  { %v1070_v40 = vpop.eup %1069 }
 0x4a0   :  { %255 = vrot.lane.b32.xlu1 %v1070_v40, %s1191_s0 }
 0x512   :  { %v256_v41 = vpop.permute.xlu1 %255 }
 0x513   :  { %v258_v42 = vmul.f32 %v1068_v34, %v256_v41 }
 0x515   :  { %262 = vrot.lane.b32.xlu0 %v258_v42, %s1192_s1 }
 0x587   :  { %v263_v43 = vpop.permute.xlu0 %262 }
 0x588   :  { %988 = vmatmul.mubr.msk.f32.vlgmr.msra.gmra.mxu0 %vm44_vm0, %v263_v43 }
 0x589   :  { %1002 = vmatpush3.msra.mxu0 %v1226_v1  ;;  %1009 = vmatprep.mubr.msk.f32.mxu0 %vm1190_vm1, %v1189_v0 }
 0x58a   :  { %1003 = vmatprep.subr.mxu0 %v1189_v0 }
 0x58b   :  { %1004 = vmatpush3.msra.mxu0 %v1228_v2 }
 0x58c   :  { %1005 = vmatprep.subr.mxu0 %v1189_v0 }
 0x58d   :  { %1006 = vmatpush3.msra.mxu0 %v1233_v3 }
 0x58e   :  { %1007 = vmatprep.subr.mxu0 %v1189_v0 }
 0x58f   :  { %1008 = vmatpush3.msra.mxu0 %v1239_v4 }
 0x590   :  { %1023 = vmatprep.subr.mxu0 %v1189_v0 }
 0x648   :  { %v332_v45 = vpop.f32.mrf.mxu0 }
 0x649   :  { %v336_v46 = vadd.f32 %v332_v45, %v260_v44 }
 0x64a   :  { %v989_v47 = vpop.f32.mrf.mxu0 }
 0x64b   :  { %1071 = vtanh.f32 %v336_v46  ;;  %v906_v49 = vmul.f32 -1.442695, %v336_v46 }
 0x64d   :  { %1073 = vpow2.f32 %v906_v49 }
 0x658   :  { %v1072_v48 = vpop.eup %1071 }
 0x659   :  { %346 = vrot.lane.b32.xlu1 %v1072_v48, %s1191_s0 }
 0x65a   :  { %v1074_v50 = vpop.eup %1073 }
 0x65b   :  { %v340_v51 = vadd.f32 1.0, %v1074_v50 }
 0x65d   :  { %1075 = vrcp.f32 %v340_v51 }
 0x66a   :  { %v1076_v52 = vpop.eup %1075 }
 0x66b   :  { %v344_v55 = vmul.f32 %v1076_v52, %v252_v39  ;;  %v566_v39 = vld [vmem:[#allocation4 + $0x28] sm:$0xff] }
 0x6cb   :  { %v347_v53 = vpop.permute.xlu1 %346 }
 0x6cc   :  { %v349_v54 = vmul.f32 %v1076_v52, %v347_v53 }
 0x6ce   :  { %351 = vrot.lane.b32.xlu0 %v349_v54, %s1192_s1 }
 0x740   :  { %v352_v56 = vpop.permute.xlu0 %351 }
 0x741   :  { %v354_v57 = vadd.f32 %v352_v56, %v344_v55 }
 0x743   :  { %1077 = vtanh.f32 %v354_v57 }
 0x750   :  { %v1078_v58 = vpop.eup %1077 }
 0x751   :  { %357 = vrot.lane.b32.xlu1 %v1078_v58, %s1191_s0 }
 0x7c3   :  { %v358_v59 = vpop.permute.xlu1 %357 }
 0x7c4   :  { %v360_v60 = vmul.f32 %v1076_v52, %v358_v59  ;;  %v668_v52 = vld [vmem:[#allocation4 + $0x30] sm:$0xff] }
 0x7c6   :  { %364 = vrot.lane.b32.xlu0 %v360_v60, %s1192_s1 }
 0x838   :  { %v365_v61 = vpop.permute.xlu0 %364 }
 0x839   :  { %999 = vmatmul.mubr.msk.f32.vlgmr.msra.gmra.mxu1 %vm44_vm0, %v365_v61 }
 0x83a   :  { %1013 = vmatpush3.msra.mxu1 %v1226_v1  ;;  %1020 = vmatprep.mubr.msk.f32.mxu1 %vm1190_vm1, %v1189_v0 }
 0x83b   :  { %1014 = vmatprep.subr.mxu1 %v1189_v0 }
 0x83c   :  { %1015 = vmatpush3.msra.mxu1 %v1228_v2 }
 0x83d   :  { %1016 = vmatprep.subr.mxu1 %v1189_v0 }
 0x83e   :  { %1017 = vmatpush3.msra.mxu1 %v1233_v3 }
 0x83f   :  { %1018 = vmatprep.subr.mxu1 %v1189_v0 }
 0x840   :  { %1019 = vmatpush3.msra.mxu1 %v1239_v4 }
 0x841   :  { %1034 = vmatprep.subr.mxu1 %v1189_v0 }
 0x8f9   :  { %v434_v63 = vpop.f32.mrf.mxu1 }
 0x8fa   :  { %v438_v5 = vadd.f32 %v434_v63, %v362_v62 }
 0x8fb   :  { %v1000_v6 = vpop.f32.mrf.mxu1 }
 0x8fc   :  { %1079 = vtanh.f32 %v438_v5  ;;  %v908_v8 = vmul.f32 -1.442695, %v438_v5 }
 0x8fe   :  { %1081 = vpow2.f32 %v908_v8 }
 0x909   :  { %v1080_v7 = vpop.eup %1079 }
 0x90a   :  { %448 = vrot.lane.b32.xlu1 %v1080_v7, %s1191_s0 }
 0x90b   :  { %v1082_v9 = vpop.eup %1081 }
 0x90c   :  { %v442_v10 = vadd.f32 1.0, %v1082_v9 }
 0x90e   :  { %1083 = vrcp.f32 %v442_v10 }
 0x91b   :  { %v1084_v11 = vpop.eup %1083 }
 0x91c   :  { %v446_v14 = vmul.f32 %v1084_v11, %v354_v57 }
 0x97c   :  { %v449_v12 = vpop.permute.xlu1 %448 }
 0x97d   :  { %v451_v13 = vmul.f32 %v1084_v11, %v449_v12 }
 0x97f   :  { %453 = vrot.lane.b32.xlu0 %v451_v13, %s1192_s1 }
 0x9f1   :  { %v454_v15 = vpop.permute.xlu0 %453 }
 0x9f2   :  { %v456_v16 = vadd.f32 %v454_v15, %v446_v14 }
 0x9f4   :  { %1085 = vtanh.f32 %v456_v16 }
 0xa01   :  { %v1086_v17 = vpop.eup %1085 }
 0xa02   :  { %459 = vrot.lane.b32.xlu1 %v1086_v17, %s1191_s0 }
 0xa74   :  { %v460_v18 = vpop.permute.xlu1 %459 }
 0xa75   :  { %v462_v19 = vmul.f32 %v1084_v11, %v460_v18  ;;  %v770_v11 = vld [vmem:[#allocation4 + $0x38] sm:$0xff] }
 0xa77   :  { %466 = vrot.lane.b32.xlu0 %v462_v19, %s1192_s1 }
 0xae9   :  { %v467_v20 = vpop.permute.xlu0 %466 }
 0xaea   :  { %1010 = vmatmul.mubr.msk.f32.vlgmr.msra.gmra.mxu0 %vm44_vm0, %v467_v20 }
 0xaeb   :  { %1024 = vmatpush3.msra.mxu0 %v1226_v1  ;;  %1031 = vmatprep.mubr.msk.f32.mxu0 %vm1190_vm1, %v1189_v0 }
 0xaec   :  { %1025 = vmatprep.subr.mxu0 %v1189_v0 }
 0xaed   :  { %1026 = vmatpush3.msra.mxu0 %v1228_v2 }
 0xaee   :  { %1027 = vmatprep.subr.mxu0 %v1189_v0 }
 0xaef   :  { %1028 = vmatpush3.msra.mxu0 %v1233_v3 }
 0xaf0   :  { %1029 = vmatprep.subr.mxu0 %v1189_v0 }
 0xaf1   :  { %1030 = vmatpush3.msra.mxu0 %v1239_v4 }
 0xbaa   :  { %v536_v22 = vpop.f32.mrf.mxu0 }
 0xbab   :  { %v540_v23 = vadd.f32 %v536_v22, %v464_v21 }
 0xbac   :  { %v1011_v24 = vpop.f32.mrf.mxu0 }
 0xbad   :  { %1087 = vtanh.f32 %v540_v23  ;;  %v910_v26 = vmul.f32 -1.442695, %v540_v23 }
 0xbaf   :  { %1089 = vpow2.f32 %v910_v26 }
 0xbba   :  { %v1088_v25 = vpop.eup %1087 }
 0xbbb   :  { %550 = vrot.lane.b32.xlu1 %v1088_v25, %s1191_s0 }
 0xbbc   :  { %v1090_v27 = vpop.eup %1089 }
 0xbbd   :  { %v544_v28 = vadd.f32 1.0, %v1090_v27 }
 0xbbf   :  { %1091 = vrcp.f32 %v544_v28 }
 0xbcc   :  { %v1092_v29 = vpop.eup %1091 }
 0xbcd   :  { %v548_v32 = vmul.f32 %v1092_v29, %v456_v16 }
 0xc2d   :  { %v551_v30 = vpop.permute.xlu1 %550 }
 0xc2e   :  { %v553_v31 = vmul.f32 %v1092_v29, %v551_v30 }
 0xc30   :  { %555 = vrot.lane.b32.xlu0 %v553_v31, %s1192_s1 }
 0xca2   :  { %v556_v33 = vpop.permute.xlu0 %555 }
 0xca3   :  { %v558_v34 = vadd.f32 %v556_v33, %v548_v32 }
 0xca5   :  { %1093 = vtanh.f32 %v558_v34 }
 0xcb2   :  { %v1094_v35 = vpop.eup %1093 }
 0xcb3   :  { %561 = vrot.lane.b32.xlu1 %v1094_v35, %s1191_s0 }
 0xd25   :  { %v562_v36 = vpop.permute.xlu1 %561 }
 0xd26   :  { %v564_v37 = vmul.f32 %v1092_v29, %v562_v36 }
 0xd28   :  { %568 = vrot.lane.b32.xlu0 %v564_v37, %s1192_s1 }
 0xd9a   :  { %v569_v38 = vpop.permute.xlu0 %568 }
 0xd9b   :  { %1021 = vmatmul.mubr.msk.f32.vlgmr.msra.gmra.mxu1 %vm44_vm0, %v569_v38 }
 0xd9c   :  { %1035 = vmatpush3.msra.mxu1 %v1226_v1  ;;  %1042 = vmatprep.mubr.msk.f32.mxu1 %vm1190_vm1, %v1189_v0 }
 0xd9d   :  { %1036 = vmatprep.subr.mxu1 %v1189_v0 }
 0xd9e   :  { %1037 = vmatpush3.msra.mxu1 %v1228_v2 }
 0xd9f   :  { %1038 = vmatprep.subr.mxu1 %v1189_v0 }
 0xda0   :  { %1039 = vmatpush3.msra.mxu1 %v1233_v3 }
 0xda1   :  { %1040 = vmatprep.subr.mxu1 %v1189_v0 }
 0xda2   :  { %1041 = vmatpush3.msra.mxu1 %v1239_v4 }
 0xe5b   :  { %v638_v40 = vpop.f32.mrf.mxu1 }
 0xe5c   :  { %v642_v41 = vadd.f32 %v638_v40, %v566_v39 }
 0xe5d   :  { %v1022_v42 = vpop.f32.mrf.mxu1 }
 0xe5e   :  { %1095 = vtanh.f32 %v642_v41  ;;  %v912_v43 = vmul.f32 -1.442695, %v642_v41 }
 0xe60   :  { %1097 = vpow2.f32 %v912_v43 }
 0xe6b   :  { %v1096_v1 = vpop.eup %1095 }
 0xe6c   :  { %652 = vrot.lane.b32.xlu1 %v1096_v1, %s1191_s0 }
 0xe6d   :  { %v1098_v44 = vpop.eup %1097 }
 0xe6e   :  { %v646_v2 = vadd.f32 1.0, %v1098_v44 }
 0xe70   :  { %1099 = vrcp.f32 %v646_v2 }
 0xe7d   :  { %v1100_v45 = vpop.eup %1099 }
 0xe7e   :  { %v650_v0 = vmul.f32 %v1100_v45, %v558_v34 }
 0xede   :  { %v653_v46 = vpop.permute.xlu1 %652 }
 0xedf   :  { %v655_v3 = vmul.f32 %v1100_v45, %v653_v46 }
 0xee1   :  { %657 = vrot.lane.b32.xlu0 %v655_v3, %s1192_s1 }
 0xf53   :  { %v658_v4 = vpop.permute.xlu0 %657 }
 0xf54   :  { %v660_v47 = vadd.f32 %v658_v4, %v650_v0 }
 0xf56   :  { %1101 = vtanh.f32 %v660_v47 }
 0xf63   :  { %v1102_v48 = vpop.eup %1101 }
 0xf64   :  { %663 = vrot.lane.b32.xlu1 %v1102_v48, %s1191_s0 }
 0xfd6   :  { %v664_v49 = vpop.permute.xlu1 %663 }
 0xfd7   :  { %v666_v50 = vmul.f32 %v1100_v45, %v664_v49 }
 0xfd9   :  { %670 = vrot.lane.b32.xlu0 %v666_v50, %s1192_s1 }
0x104b   :  { %v671_v51 = vpop.permute.xlu0 %670 }
0x104c   :  { %1032 = vmatmul.mubr.msk.f32.vlgmr.msra.gmra.mxu0 %vm44_vm0, %v671_v51 }
0x110c   :  { %v740_v53 = vpop.f32.mrf.mxu0 }
0x110d   :  { %v744_v54 = vadd.f32 %v740_v53, %v668_v52 }
0x110e   :  { %v1033_v55 = vpop.f32.mrf.mxu0 }
0x110f   :  { %1103 = vtanh.f32 %v744_v54  ;;  %v914_v57 = vmul.f32 -1.442695, %v744_v54 }
0x1111   :  { %1105 = vpow2.f32 %v914_v57 }
0x111c   :  { %v1104_v56 = vpop.eup %1103 }
0x111d   :  { %754 = vrot.lane.b32.xlu1 %v1104_v56, %s1191_s0 }
0x111e   :  { %v1106_v58 = vpop.eup %1105 }
0x111f   :  { %v748_v59 = vadd.f32 1.0, %v1106_v58 }
0x1121   :  { %1107 = vrcp.f32 %v748_v59 }
0x112e   :  { %v1108_v60 = vpop.eup %1107 }
0x112f   :  { %v752_v63 = vmul.f32 %v1108_v60, %v660_v47 }
0x118f   :  { %v755_v61 = vpop.permute.xlu1 %754 }
0x1190   :  { %v757_v62 = vmul.f32 %v1108_v60, %v755_v61 }
0x1192   :  { %759 = vrot.lane.b32.xlu0 %v757_v62, %s1192_s1 }
0x1204   :  { %v760_v5 = vpop.permute.xlu0 %759 }
0x1205   :  { %v762_v6 = vadd.f32 %v760_v5, %v752_v63 }
0x1207   :  { %1109 = vtanh.f32 %v762_v6 }
0x1214   :  { %v1110_v7 = vpop.eup %1109 }
0x1215   :  { %765 = vrot.lane.b32.xlu1 %v1110_v7, %s1191_s0 }
0x1287   :  { %v766_v8 = vpop.permute.xlu1 %765 }
0x1288   :  { %v768_v9 = vmul.f32 %v1108_v60, %v766_v8 }
0x128a   :  { %772 = vrot.lane.b32.xlu0 %v768_v9, %s1192_s1 }
0x12fc   :  { %v773_v10 = vpop.permute.xlu0 %772 }
0x12fd   :  { %1043 = vmatmul.mubr.msk.f32.vlgmr.msra.gmra.mxu1 %vm44_vm0, %v773_v10 }
0x13bd   :  { %v842_v12 = vpop.f32.mrf.mxu1 }
0x13be   :  { %v846_v13 = vadd.f32 %v842_v12, %v770_v11 }
0x13bf   :  { %v1044_v14 = vpop.f32.mrf.mxu1 }
0x13c0   :  { %1111 = vtanh.f32 %v846_v13  ;;  %v916_v16 = vmul.f32 -1.442695, %v846_v13 }
0x13c2   :  { %1113 = vpow2.f32 %v916_v16 }
0x13cd   :  { %v1112_v15 = vpop.eup %1111 }
0x13ce   :  { %856 = vrot.lane.b32.xlu1 %v1112_v15, %s1191_s0 }
0x13cf   :  { %v1114_v17 = vpop.eup %1113 }
0x13d0   :  { %v850_v18 = vadd.f32 1.0, %v1114_v17 }
0x13d2   :  { %1115 = vrcp.f32 %v850_v18 }
0x13df   :  { %v1116_v19 = vpop.eup %1115 }
0x13e0   :  { %v854_v22 = vmul.f32 %v1116_v19, %v762_v6 }
0x1440   :  { %v857_v20 = vpop.permute.xlu1 %856 }
0x1441   :  { %v859_v21 = vmul.f32 %v1116_v19, %v857_v20 }
0x1443   :  { %861 = vrot.lane.b32.xlu0 %v859_v21, %s1192_s1 }
0x14b5   :  { %v862_v23 = vpop.permute.xlu0 %861 }
0x14b6   :  { %v864_v24 = vadd.f32 %v862_v23, %v854_v22 }
0x14b8   :  { %1117 = vtanh.f32 %v864_v24 }
0x14c5   :  { %v1118_v25 = vpop.eup %1117 }
0x14c6   :  { %867 = vrot.lane.b32.xlu1 %v1118_v25, %s1191_s0 }
0x14ca   :  { %877 = vrot.lane.b32.xlu1 %v864_v24, %s1193_s21 }
0x1538   :  { %v868_v26 = vpop.permute.xlu1 %867 }
0x1539   :  { %v870_v27 = vmul.f32 %v1116_v19, %v868_v26 }
0x153b   :  { %872 = vrot.lane.b32.xlu0 %v870_v27, %s1192_s1 }
0x153c   :  { %v878_v28 = vpop.permute.xlu1 %877 }
0x153d   :  { %880 = vst.msk [vmem:[#allocation3] sm:$0xff] %vm44_vm0, %v878_v28 }
0x15ad   :  { %v873_v29 = vpop.permute.xlu0 %872 }
0x15ae   :  { %875 = vst.msk [vmem:[#allocation2] sm:$0xff] %vm44_vm0, %v873_v29  ;;  %884 = vst.msk [vmem:[#allocation9] sm:$0xff] %vm44_vm0, %v873_v29 }
0x15af   :  { %1170 = shalt.err (!%p1167_p0)
}
0x15b0   :  { %894 = dma.vmem_to_hbm [thread:$0]  %s892_s23, 128, %s1357_s2, [#allocation6]  }
0x15b1   :  { %1183 = dma.done.wait [#allocation6], 128  }
0x15b2   :  { %1184 = vsyncadd [#allocation6], 4294967168 }
0x15b3   :  { %898 = vsyncpa [#allocation5], 1 }
0x15b4   :  { %899 = vsyncpa [#allocation8], 1 }
0x15b5   :  { %900 = vsyncpa [#allocation6], 1 }

</bundles_post_ra>
